<compile_context>
chip_gen: v6e
topology: v6e:2x2x1
jax: 0.10.0
libtpu: 0.0.40
codegen_flags: <defaults>
</compile_context>

<pallas_src>
import jax
import jax.numpy as jnp
from jax.experimental import pallas as pl
from jax.experimental.pallas import tpu as pltpu


def _round_up(x, m):
    return (x + m - 1) // m * m


def _pick_row_tile(rows, per_row_bytes, *, align, budget_bytes=4 << 20,
                   max_tile_rows=2048):
    """Largest row tile (multiple of `align`, <= max_tile_rows) whose per-block
    input footprint stays under `budget_bytes`, preferring tiles that divide the
    aligned row count so no runtime padding is needed."""
    rows_a = _round_up(rows, align)
    by_budget = budget_bytes // max(per_row_bytes, 1)
    cap = max(align, (min(max_tile_rows, by_budget) // align) * align)
    tile = min(rows_a, cap)
    t = tile
    while t > align and rows_a % t:
        t -= align
    if rows_a % t == 0:
        tile = t
    rows_padded = _round_up(rows, tile)
    return tile, rows_padded


# ----------------------------------------------------------------------------
# Kernel 1 (init-time): silhouette mask
#   (image_ref[..., :3].max(-1) != 0).astype(float32)
# ----------------------------------------------------------------------------
def _mask_kernel(rgb_ref, mask_ref):
    # rgb_ref : (3, T, W) channel-major block of the reference image (f32)
    # mask_ref: (T, W) f32 output block
    m = jnp.maximum(jnp.maximum(rgb_ref[0], rgb_ref[1]), rgb_ref[2])
    mask_ref[...] = (m != 0.0).astype(jnp.float32)


def compute_image_ref_mask(image_ref_rgba):
    """(B, H, W, C>=3) float -> (B, H, W) float32 binary silhouette mask."""
    B, H, W = image_ref_rgba.shape[:3]
    rows = B * H
    # Channel-major layout => lane-dense (T, W) slabs and a pure-VPU 3-way max.
    # The transpose is an init-time-only XLA op (runs once per Model).
    rgb = jnp.transpose(image_ref_rgba[..., :3].astype(jnp.float32),
                        (3, 0, 1, 2)).reshape(3, rows, W)
    per_row = 3 * W * 4 + W * 4              # f32 input rows + f32 output row
    tile, rows_padded = _pick_row_tile(rows, per_row, align=8)
    if rows_padded > rows:
        rgb = jnp.pad(rgb, ((0, 0), (0, rows_padded - rows), (0, 0)))
    mask = pl.pallas_call(
        _mask_kernel,
        out_shape=jax.ShapeDtypeStruct((rows_padded, W), jnp.float32),
        grid=(rows_padded // tile,),
        in_specs=[pl.BlockSpec((3, tile, W), lambda i: (0, i, 0))],
        out_specs=pl.BlockSpec((tile, W), lambda i: (i, 0)),
        compiler_params=pltpu.CompilerParams(
            dimension_semantics=("parallel",),
            vmem_limit_bytes=32 * 1024 * 1024),
    )(rgb)
    return mask[:rows].reshape(B, H, W)


# ----------------------------------------------------------------------------
# Kernel 2 (per forward): fused silhouette loss
#   sum((rendered[..., 3] - mask) ** 2)
# The rendered RGBA is read directly (flattened so that lane % 4 == 3 is the
# alpha channel); the mask is pre-scattered onto those alpha lanes as bf16.
# Each grid step emits an (8, <=128) partial sum built with vreg-aligned VPU
# adds only; the final reduce over the tiny partials array happens in XLA.
# ----------------------------------------------------------------------------
def _loss_partial_kernel(img_ref, mask_ref, out_ref):
    T, L = img_ref.shape
    a = img_ref[...]                                   # (T, L) f32
    m = mask_ref[...].astype(jnp.float32)              # (T, L) bf16 -> f32
    lane = jax.lax.broadcasted_iota(jnp.int32, (T, L), 1)
    d = jnp.where(lane % 4 == 3, a - m, 0.0)           # keep only the alpha lanes
    sq = d * d
    # Fold sublanes T -> 8 with vreg-aligned static slices (pure VPU adds).
    acc = sq[0:8, :]
    for r in range(1, T // 8):
        acc = acc + sq[r * 8:(r + 1) * 8, :]
    # Fold lanes L -> 128 when L is a clean multiple of the vreg lane width.
    if L > 128 and L % 128 == 0:
        acc128 = acc[:, 0:128]
        for j in range(1, L // 128):
            acc128 = acc128 + acc[:, j * 128:(j + 1) * 128]
        acc = acc128
    out_ref[...] = acc


def _loss_partial_sums(rgba2d, mask_exp2d, row_tile):
    rows_p, L = rgba2d.shape
    n_blocks = rows_p // row_tile
    l_out = 128 if (L > 128 and L % 128 == 0) else L
    return pl.pallas_call(
        _loss_partial_kernel,
        out_shape=jax.ShapeDtypeStruct((n_blocks * 8, l_out), jnp.float32),
        grid=(n_blocks,),
        in_specs=[pl.BlockSpec((row_tile, L), lambda i: (i, 0)),
                  pl.BlockSpec((row_tile, L), lambda i: (i, 0))],
        out_specs=pl.BlockSpec((8, l_out), lambda i: (i, 0)),
        compiler_params=pltpu.CompilerParams(
            dimension_semantics=("parallel",),   # no shared accumulator => safe
            vmem_limit_bytes=32 * 1024 * 1024),
    )(rgba2d, mask_exp2d)


# ----------------------------------------------------------------------------
# Model wrapper (mirrors the PyTorch nn.Module)
# ----------------------------------------------------------------------------
class SilhouetteModel:
    def __init__(self, image_ref_rgba, transl_init):
        B, H, W = image_ref_rgba.shape[:3]
        self._B, self._H, self._W = B, H, W

        # registered buffer: binary silhouette mask (Pallas kernel, init-time)
        self.image_ref = compute_image_ref_mask(image_ref_rgba)
        # nn.Parameter(flamelayer.transl) equivalent (deterministic init)
        self.transl = transl_init

        # ---- static plan for the per-forward loss kernel --------------------
        rows, L = B * H, W * 4
        if L < 128 and (rows * L) % 128 == 0:
            rows, L = (rows * L) // 128, 128          # widen tiny lane dims
        per_row = L * (4 + 2)                         # f32 rgba + bf16 mask
        tile, rows_padded = _pick_row_tile(rows, per_row, align=16,
                                           max_tile_rows=1024)
        self._rows, self._L = rows, L
        self._tile, self._rows_padded = tile, rows_padded

        # bf16 mask pre-scattered onto the alpha lanes, in the exact 2-D layout
        # the loss kernel reads (built once; binary values are exact in bf16).
        mexp = jnp.zeros((B, H, W, 4), jnp.bfloat16)
        mexp = mexp.at[..., 3].set(self.image_ref.astype(jnp.bfloat16))
        mexp = mexp.reshape(rows, L)
        if rows_padded > rows:
            mexp = jnp.pad(mexp, ((0, rows_padded - rows), (0, 0)))
        self._mask_exp = mexp

    def forward(self, rendered_image):
        # TODO(synk): make_mesh(flamelayer) + the PyTorch3D silhouette renderer
        # (FLAME mesh rasterization) have no clean Pallas equivalent; the
        # rendered RGBA image is supplied as an input instead.
        assert rendered_image.shape == (self._B, self._H, self._W, 4)
        a = rendered_image.astype(jnp.float32).reshape(self._rows, self._L)
        if self._rows_padded > self._rows:
            a = jnp.pad(a, ((0, self._rows_padded - self._rows), (0, 0)))
        partials = _loss_partial_sums(a, self._mask_exp, self._tile)
        loss = jnp.sum(partials)
        return loss, rendered_image


# ----------------------------------------------------------------------------
if __name__ == "__main__":
    key = jax.random.PRNGKey(0)
    k_ref, k_zero = jax.random.split(key, 2)

    B, H, W = 2, 16, 16

    # Deterministic "reference photo" RGBA with ~half the pixels zeroed so the
    # silhouette mask is non-trivial.
    ref_rgba = jax.random.uniform(k_ref, (B, H, W, 4), dtype=jnp.float32)
    zero_mask = (jax.random.uniform(k_zero, (B, H, W, 1)) > 0.5).astype(jnp.float32)
    ref_rgba = ref_rgba * zero_mask

    # Deterministic stand-in for the renderer output (RGBA image).
    rendered = jax.random.uniform(jax.random.fold_in(key, 7), (B, H, W, 4),
                                  dtype=jnp.float32)

    transl_init = jnp.zeros((1, 3), dtype=jnp.float32)   # flamelayer.transl shape

    model = SilhouetteModel(ref_rgba, transl_init)
    loss, image = model.forward(rendered)
    loss = jax.block_until_ready(loss)
    image = jax.block_until_ready(image)

    # Pure-JAX reference of the full forward semantics.
    ref_mask = (jnp.max(ref_rgba[..., :3], axis=-1) != 0).astype(jnp.float32)
    ref_loss = jnp.sum((rendered[..., 3] - ref_mask) ** 2)
    assert image.shape == (B, H, W, 4)
    assert jnp.allclose(model.image_ref, ref_mask), "mask mismatch"
    assert jnp.allclose(loss, ref_loss, rtol=1e-5, atol=1e-5), (loss, ref_loss)

    print("KERNEL_OK")
</pallas_src>

<mosaic_0001>
module attributes {stable_mosaic.version = 11 : i64} {
  func.func @_mask_kernel(%arg0: i32, %arg1: memref<3x32x16xf32, #tpu.memory_space<vmem>>, %arg2: memref<32x16xf32, #tpu.memory_space<vmem>>) attributes {dimension_semantics = [#tpu.dimension_semantics<parallel>], iteration_bounds = array<i64: 1>, scalar_prefetch = 0 : i64, scratch_operands = 0 : i64, tpu.core_type = #tpu.core_type<tc>, window_params = [{transform_indices = @transform_0, window_bounds = array<i64: 3, 32, 16>}, {transform_indices = @transform_1, window_bounds = array<i64: 32, 16>}]} {
    %c0 = arith.constant 0 : index
    %c0_0 = arith.constant 0 : index
    %c0_1 = arith.constant 0 : index
    %0 = vector.load %arg1[%c0, %c0_0, %c0_1] : memref<3x32x16xf32, #tpu.memory_space<vmem>>, vector<1x32x16xf32>
    %1 = vector.shape_cast %0 : vector<1x32x16xf32> to vector<32x16xf32>
    %c1 = arith.constant 1 : index
    %c0_2 = arith.constant 0 : index
    %c0_3 = arith.constant 0 : index
    %2 = vector.load %arg1[%c1, %c0_2, %c0_3] : memref<3x32x16xf32, #tpu.memory_space<vmem>>, vector<1x32x16xf32>
    %3 = vector.shape_cast %2 : vector<1x32x16xf32> to vector<32x16xf32>
    %4 = arith.maximumf %1, %3 : vector<32x16xf32>
    %c2 = arith.constant 2 : index
    %c0_4 = arith.constant 0 : index
    %c0_5 = arith.constant 0 : index
    %5 = vector.load %arg1[%c2, %c0_4, %c0_5] : memref<3x32x16xf32, #tpu.memory_space<vmem>>, vector<1x32x16xf32>
    %6 = vector.shape_cast %5 : vector<1x32x16xf32> to vector<32x16xf32>
    %7 = arith.maximumf %4, %6 : vector<32x16xf32>
    %cst = arith.constant 0.000000e+00 : f32
    %8 = vector.broadcast %cst : f32 to vector<32x16xf32>
    %9 = arith.cmpf one, %7, %8 : vector<32x16xf32>
    %10 = arith.extui %9 : vector<32x16xi1> to vector<32x16xi32>
    %11 = arith.sitofp %10 : vector<32x16xi32> to vector<32x16xf32>
    %c0_6 = arith.constant 0 : index
    %c0_7 = arith.constant 0 : index
    %12 = vector.load %arg2[%c0_6, %c0_7] : memref<32x16xf32, #tpu.memory_space<vmem>>, vector<32x16xf32>
    tpu.vector_store %arg2[%c0_6, %c0_7], %11 {strides = array<i32>} : memref<32x16xf32, #tpu.memory_space<vmem>>, vector<32x16xf32>,
    return
  }
  func.func @transform_0(%arg0: i32) -> (i32, i32, i32) {
    %c0_i32 = arith.constant 0 : i32
    %c0_i32_0 = arith.constant 0 : i32
    %c0_i32_1 = arith.constant 0 : i32
    return %c0_i32, %arg0, %c0_i32_0 : i32, i32, i32
  }
  func.func @transform_1(%arg0: i32) -> (i32, i32) {
    %c0_i32 = arith.constant 0 : i32
    %c0_i32_0 = arith.constant 0 : i32
    return %arg0, %c0_i32 : i32, i32
  }
}

</mosaic_0001>

<bundles_post_ra>
// kernel: tpu_custom_call.1
= control target key start
LH: loop header
LB: loop body
LE: loop exit
PB: predicated region body
PF: predicated region fallthrough
CT: control target
= control target key end

     0   :  { %vm42_vm0 = vcmask 130048   ;;  %v64_v19 = vmov 0.0   ;;  %s127_s0 = inlined_call_operand.vmem [shape: f32[3,32,16], index: 0, kind: input, shape index: {}]   ;;  %s128_s1 = inlined_call_operand.vmem [shape: f32[32,16], index: 1, kind: output, shape index: {}]  }
   0x1   :  { %v8_v0 = vld [vmem:[%s127_s0] sm:$0xff]  ;;  %v9_v4 = vld [vmem:[%s127_s0 + $0x8] sm:$0xff]  ;;  %v10_v8 = vld [vmem:[%s127_s0 + $0x10] sm:$0xff] }
   0x2   :  { %v51_v1 = vld [vmem:[%s127_s0 + $0x20] sm:$0xff]  ;;  %v52_v5 = vld [vmem:[%s127_s0 + $0x28] sm:$0xff]  ;;  %v53_v9 = vld [vmem:[%s127_s0 + $0x30] sm:$0xff] }
   0x3   :  { %v55_v2 = vld [vmem:[%s127_s0 + $0x40] sm:$0xff]  ;;  %v17_v3 = vmax.f32 %v8_v0, %v51_v1  ;;  %v56_v6 = vld [vmem:[%s127_s0 + $0x48] sm:$0xff]  ;;  %v18_v7 = vmax.f32 %v9_v4, %v52_v5  ;;  %v57_v10 = vld [vmem:[%s127_s0 + $0x50] sm:$0xff]  ;;  %v19_v12 = vmax.f32 %v10_v8, %v53_v9 }
   0x4   :  { %v11_v13 = vld [vmem:[%s127_s0 + $0x18] sm:$0xff] }
   0x5   :  { %v26_v11 = vmax.f32 %v17_v3, %v55_v2  ;;  %v54_v14 = vld [vmem:[%s127_s0 + $0x38] sm:$0xff]  ;;  %v27_v16 = vmax.f32 %v18_v7, %v56_v6  ;;  %v28_v18 = vmax.f32 %v19_v12, %v57_v10 }
   0x6   :  { %v58_v15 = vld [vmem:[%s127_s0 + $0x58] sm:$0xff]  ;;  %v20_v17 = vmax.f32 %v11_v13, %v54_v14 }
   0x7   :  { %vm30_vm1 = vcmp.ne.f32.partialorder %v26_v11, 0.0  ;;  %vm31_vm2 = vcmp.ne.f32.partialorder %v27_v16, 0.0  ;;  %vm32_vm3 = vcmp.ne.f32.partialorder %v28_v18, 0.0 }
   0x8   :  { %v59_v20 = vsel %vm30_vm1, 1.0, %v64_v19  ;;  %v29_v21 = vmax.f32 %v20_v17, %v58_v15  ;;  %v60_v22 = vsel %vm31_vm2, 1.0, %v64_v19  ;;  %v61_v23 = vsel %vm32_vm3, 1.0, %v64_v19 }
   0x9   :  { %43 = vst.msk [vmem:[%s128_s1] sm:$0xff] %vm42_vm0, %v59_v20  ;;  %44 = vst.msk [vmem:[%s128_s1 + $0x8] sm:$0xff] %vm42_vm0, %v60_v22 }
   0xa   :  { %vm33_vm4 = vcmp.ne.f32.partialorder %v29_v21, 0.0  ;;  %45 = vst.msk [vmem:[%s128_s1 + $0x10] sm:$0xff] %vm42_vm0, %v61_v23 }
   0xb   :  { %v62_v24 = vsel %vm33_vm4, 1.0, %v64_v19 }
   0xc   :  { %46 = vst.msk [vmem:[%s128_s1 + $0x18] sm:$0xff] %vm42_vm0, %v62_v24 }

</bundles_post_ra>
